<compile_context>
chip_gen: v5e
topology: v5e:2x2
jax: 0.10.0
libtpu: 0.0.40
codegen_flags: <defaults>
</compile_context>

<pallas_src>
import jax
import jax.numpy as jnp
from jax.experimental import pallas as pl
from jax.experimental.pallas import tpu as pltpu


def _copy_kernel(x_ref, o_ref):
    # Straight tile copy: no VPU work, purely HBM/DMA bound.
    o_ref[...] = x_ref[...]


# Candidate lane widths (multiples of 128) for the flattened 2D layout.
# Large widths -> unmasked full-lane vst stores.
_LANE_CANDIDATES = (2048, 1024, 512, 256, 128)


def _chip_generation() -> str:
    """Best-effort TPU generation detection ('v5' / 'v6' / 'v7' / 'unknown')."""
    try:
        kind = jax.devices()[0].device_kind.lower()
    except Exception:  # pragma: no cover - defensive
        return "unknown"
    if "7" in kind:
        return "v7"
    if "6" in kind:
        return "v6"
    if "5" in kind:
        return "v5"
    return "unknown"


def _tile_policy():
    """Return (tile_byte_budget, vmem_limit_bytes_or_None, try_core_parallel)."""
    gen = _chip_generation()
    if gen == "v7":
        # 2 arrays x 2 buffers x 6 MiB = 24 MiB live per TensorCore, safely
        # under v7x's 64 MiB physical VMEM even with CORE_PARALLEL on 2 cores.
        return 6 * 1024 * 1024, 28 << 20, True
    if gen == "v6":
        # Bigger tiles amortize the ~0.35 us per-grid-step overhead; 4 x 6 MiB
        # = 24 MiB live, raise the scoped limit to 48 MiB (128 MiB physical).
        return 6 * 1024 * 1024, 48 << 20, False
    # v5e / unknown: 4 x 2 MiB = 8 MiB live fits the 16 MiB scoped default,
    # and 2 MiB tiles already sit near the measured HBM-roofline knee.
    return 2 * 1024 * 1024, None, False


def skip_connection(x: jax.Array, *, force_kernel: bool = False,
                    donate_input: bool = False) -> jax.Array:
    """Pallas equivalent of SkipConnection.forward(x) -> x.

    Default: true identity (no kernel, zero HBM traffic).  Set
    `force_kernel=True` to route the data through a Pallas copy kernel.
    Set `donate_input=True` only if the caller donates x's buffer; then the
    output aliases the input and no second HBM allocation is materialized.
    """
    if not force_kernel:
        # Fast path: nothing the kernel does can beat not running it.
        return x

    orig_shape = x.shape
    dtype = x.dtype

    n = 1
    for d in orig_shape:
        n *= int(d)
    if n == 0:
        return x  # empty array: nothing to copy

    # Flatten the contiguous (row-major) array to a lane-dense 2D layout.
    cols = None
    for c in _LANE_CANDIDATES:
        if n % c == 0:
            cols = c
            break
    if cols is None:
        # Element count not a multiple of 128: a single whole-array VMEM block
        # would risk a scoped-VMEM OOM and masked partial-lane stores.  The
        # module is an identity, so simply return x.
        # TODO(synk): optionally tile a padded flat layout with a masked tail.
        return x
    rows = n // cols

    itemsize = jnp.dtype(dtype).itemsize
    # Dtype-aware sublane alignment: 8 rows for 4-byte dtypes, 16 for bf16/fp16,
    # 32 for int8/fp8 (packed sublanes) -> keeps every vst unmasked.
    sublane = max(8, (8 * 4) // itemsize)

    tile_budget, vmem_limit, try_core_parallel = _tile_policy()

    max_rows = (tile_budget // (cols * itemsize)) // sublane * sublane
    max_rows = max(sublane, max_rows)

    total_bytes = n * itemsize
    if rows > max_rows:
        block_rows = max_rows
    elif total_bytes > (1 << 20) and rows >= 4 * sublane:
        # Force >=4 grid steps so the pipeline overlaps the writeback of tile
        # i-1 with the read of tile i+1 instead of serializing one big block.
        block_rows = ((pl.cdiv(rows, 4) + sublane - 1) // sublane) * sublane
        block_rows = min(block_rows, max_rows, rows)
    else:
        block_rows = rows

    x2d = x.reshape(rows, cols)  # metadata-only: NCHW is row-major contiguous
    grid = (pl.cdiv(rows, block_rows),)
    aliases = {0: 0} if donate_input else {}
    cost = pl.CostEstimate(flops=0, transcendentals=0,
                           bytes_accessed=2 * n * itemsize)

    def _call(row_semantics):
        params = {"dimension_semantics": (row_semantics,)}
        if vmem_limit is not None:
            params["vmem_limit_bytes"] = vmem_limit
        return pl.pallas_call(
            _copy_kernel,
            out_shape=jax.ShapeDtypeStruct((rows, cols), dtype),
            grid=grid,
            in_specs=[pl.BlockSpec((block_rows, cols), lambda i: (i, 0))],
            out_specs=pl.BlockSpec((block_rows, cols), lambda i: (i, 0)),
            input_output_aliases=aliases,
            cost_estimate=cost,
            compiler_params=pltpu.CompilerParams(**params),
        )(x2d)

    if try_core_parallel:
        # CORE_PARALLEL actually shards the row axis across v7x's 2 TensorCores
        # (plain "parallel" vs "arbitrary" doesn't change codegen).  Fall back
        # defensively if the current chip/toolchain rejects it.
        try:
            out2d = _call(pltpu.CORE_PARALLEL)
        except Exception:
            out2d = _call("parallel")
    else:
        out2d = _call("parallel")

    return out2d.reshape(orig_shape)


if __name__ == "__main__":
    key = jax.random.PRNGKey(0)
    # Small NCHW-style input consistent with typical skip-connection usage.
    x = jax.random.normal(key, (2, 4, 16, 16), dtype=jnp.float32)

    # Default fast path: identity with no kernel launch.
    y_fast = skip_connection(x)
    jax.block_until_ready(y_fast)
    assert y_fast.shape == x.shape and y_fast.dtype == x.dtype
    assert bool(jnp.array_equal(y_fast, x)), "fast-path identity mismatch"

    # Forced Pallas path: exercises the copy kernel once.
    y_kernel = skip_connection(x, force_kernel=True)
    jax.block_until_ready(y_kernel)
    assert y_kernel.shape == x.shape and y_kernel.dtype == x.dtype
    assert bool(jnp.array_equal(y_kernel, x)), "kernel identity mismatch"

    print("KERNEL_OK")
</pallas_src>

<mosaic_0001>
module attributes {stable_mosaic.version = 11 : i64} {
  func.func @_copy_kernel(%arg0: i32, %arg1: memref<1x2048xf32, #tpu.memory_space<vmem>>, %arg2: memref<1x2048xf32, #tpu.memory_space<vmem>>) attributes {dimension_semantics = [#tpu.dimension_semantics<parallel>], iteration_bounds = array<i64: 1>, scalar_prefetch = 0 : i64, scratch_operands = 0 : i64, tpu.core_type = #tpu.core_type<tc>, window_params = [{transform_indices = @transform_0, window_bounds = array<i64: 1, 2048>}, {transform_indices = @transform_1, window_bounds = array<i64: 1, 2048>}]} {
    %c0 = arith.constant 0 : index
    %c0_0 = arith.constant 0 : index
    %0 = vector.load %arg1[%c0, %c0_0] : memref<1x2048xf32, #tpu.memory_space<vmem>>, vector<1x2048xf32>
    %c0_1 = arith.constant 0 : index
    %c0_2 = arith.constant 0 : index
    %1 = vector.load %arg2[%c0_1, %c0_2] : memref<1x2048xf32, #tpu.memory_space<vmem>>, vector<1x2048xf32>
    tpu.vector_store %arg2[%c0_1, %c0_2], %0 {strides = array<i32>} : memref<1x2048xf32, #tpu.memory_space<vmem>>, vector<1x2048xf32>,
    return
  }
  func.func @transform_0(%arg0: i32) -> (i32, i32) {
    %c0_i32 = arith.constant 0 : i32
    %c0_i32_0 = arith.constant 0 : i32
    return %arg0, %c0_i32 : i32, i32
  }
  func.func @transform_1(%arg0: i32) -> (i32, i32) {
    %c0_i32 = arith.constant 0 : i32
    %c0_i32_0 = arith.constant 0 : i32
    return %arg0, %c0_i32 : i32, i32
  }
}

</mosaic_0001>

<bundles_post_ra>
// kernel: tpu_custom_call.1
= control target key start
LH: loop header
LB: loop body
LE: loop exit
PB: predicated region body
PF: predicated region fallthrough
CT: control target
= control target key end

     0   :  { %6 = vsyncpa [#allocation3], 0  ;;  %s116_s0 = inlined_call_operand.hbm [shape: f32[1,2048], index: 0, kind: input, shape index: {}]   ;;  %s117_s1 = inlined_call_operand.hbm [shape: f32[1,2048], index: 1, kind: output, shape index: {}]  }
   0x1   :  { %7 = vsyncpa [#allocation4], 0  ;;  %s13_s8 = sshll.u32 %s116_s0, 4  ;;  %s98_s9 = smov [#allocation2]   ;;  %s14_s8 = int_to_ptr.hbm [resolvable:$true] %s13_s8 }
   0x2   :  { %s15_s10 = sshll.u32 %s98_s9, 4  ;;  %s16_s10 = int_to_ptr.vmem [resolvable:$true] %s15_s10 }
   0x3   :  { %18 = dma.hbm_to_vmem [thread:$0]  %s14_s8, 256, %s16_s10, [#allocation3]  }
   0x4   :  { %94 = dma.done.wait [#allocation3], 256  }
   0x5   :  { %95 = vsyncadd [#allocation3], 4294967040  ;;  %s99_s11 = smov [#allocation5]   ;;  %s34_s15 = sshll.u32 %s117_s1, 4  ;;  %v23_v0 = vld [vmem:[#allocation2] sm:$0xff]  ;;  %v24_v1 = vld [vmem:[#allocation2 + $0x8] sm:$0xff]  ;;  %s35_s15 = int_to_ptr.hbm [resolvable:$true] %s34_s15 }
   0x6   :  { %s32_s12 = sshll.u32 %s99_s11, 4  ;;  %25 = vst [vmem:[#allocation5] sm:$0xff] %v23_v0  ;;  %s33_s12 = int_to_ptr.vmem [resolvable:$true] %s32_s12 }
   0x7   :  { %26 = vst [vmem:[#allocation5 + $0x8] sm:$0xff] %v24_v1 }
   0x8   :  { %37 = dma.vmem_to_hbm [thread:$0]  %s33_s12, 256, %s35_s15, [#allocation4]  }
   0x9   :  { %96 = dma.done.wait [#allocation4], 256  }
   0xa   :  { %97 = vsyncadd [#allocation4], 4294967040 }
   0xb   :  { %42 = vsyncpa [#allocation3], 1 }
   0xc   :  { %43 = vsyncpa [#allocation4], 1 }

</bundles_post_ra>
